<compile_context>
chip_gen: v7x
topology: tpu7x:2x2x1
jax: 0.10.0
libtpu: 0.0.40
codegen_flags: <defaults>
</compile_context>

<pallas_src>
import functools

import jax
import jax.numpy as jnp
from jax import lax
from jax.experimental import pallas as pl
from jax.experimental.pallas import tpu as pltpu


_BLOCK_BUDGET_BYTES = 4 * 1024 * 1024   # per I/O block; safe for v7x 64 MiB VMEM
_VMEM_LIMIT_BYTES = 48 * 1024 * 1024    # raise above v5e's 16 MiB scoped default


def _sublane_multiple(itemsize):
    # f32 -> 8 sublanes, bf16/f16 -> 16, int8/fp8 -> 32 (packed vreg rows).
    return max(8, 32 // max(int(itemsize), 1))


def _pick_row_tile(n_rows, width, itemsize):
    """Row tile: ~4 MiB per I/O block, sublane-aligned, >=2 grid steps if possible."""
    sub = _sublane_multiple(itemsize)
    rt = _BLOCK_BUDGET_BYTES // max(width * itemsize, 1)
    rt = max(sub, (rt // sub) * sub)
    if rt >= n_rows:
        if n_rows >= 2 * sub:
            # Split into at least 2 grid steps so the "parallel" axis can be
            # sharded across v7x's two TensorCores.
            rt = (((n_rows + 1) // 2) + sub - 1) // sub * sub
        else:
            rt = n_rows  # full-extent block is always legal
    return rt


def _ln_general_kernel(x_ref, w_ref, b_ref, o_ref, *, inv_d, eps):
    """LayerNorm on a (row_tile, D) slab, D >= 128 (or odd D fallback)."""
    x = x_ref[...].astype(jnp.float32)
    s1 = jnp.sum(x, axis=-1, keepdims=True)
    s2 = jnp.sum(x * x, axis=-1, keepdims=True)
    mean = s1 * inv_d
    var = jnp.maximum(s2 * inv_d - mean * mean, 0.0)   # single-pass, clamp cancellation
    inv = lax.rsqrt(var + eps)                         # EUP slot
    scale = inv * w_ref[...]                           # fold gamma into the scale
    o_ref[...] = ((x - mean) * scale + b_ref[...]).astype(o_ref.dtype)


def _ln_packed_kernel(x_ref, seg_ref, w_ref, b_ref, o_ref, *, inv_d, eps):
    """LayerNorm with g = 128//D rows packed per 128-lane row.

    Per-segment sums via the MXU (block-diagonal ones matrix) -> lane-dense
    stores, no cross-lane XLU reductions.
    """
    x = x_ref[...].astype(jnp.float32)
    seg = seg_ref[...]
    s1 = jnp.dot(x, seg, preferred_element_type=jnp.float32)        # segment sums, broadcast
    s2 = jnp.dot(x * x, seg, preferred_element_type=jnp.float32)    # segment sum of squares
    mean = s1 * inv_d
    var = jnp.maximum(s2 * inv_d - mean * mean, 0.0)
    inv = lax.rsqrt(var + eps)
    scale = inv * w_ref[...]
    o_ref[...] = ((x - mean) * scale + b_ref[...]).astype(o_ref.dtype)


def normalization(x, weight=None, bias=None, *, method="layer", eps=1e-5):
    """Forward of the Normalization module.

    method='layer' -> LayerNorm(d_model) over the last dim (elementwise affine).
    method='none'  -> identity.
    x: (..., d_model)
    """
    if method == "none":
        # The torch module uses `lambda x: x` here: pure identity, no kernel needed.
        return x
    assert method == "layer"

    orig_shape = x.shape
    D = orig_shape[-1]
    N = 1
    for s in orig_shape[:-1]:
        N *= s
    if N == 0 or D == 0:
        return x

    if weight is None:
        weight = jnp.ones((D,), jnp.float32)
    if bias is None:
        bias = jnp.zeros((D,), jnp.float32)
    # Pre-cast params to f32 once in the wrapper (hoists per-step casts).
    w_f32 = weight.astype(jnp.float32).reshape(1, D)
    b_f32 = bias.astype(jnp.float32).reshape(1, D)

    itemsize = jnp.dtype(x.dtype).itemsize
    compiler_params = pltpu.CompilerParams(
        dimension_semantics=("parallel",),
        vmem_limit_bytes=_VMEM_LIMIT_BYTES,
    )
    inv_d = 1.0 / float(D)
    eps = float(eps)

    # ---- lane-dense small-d_model path: pack g = 128 // D rows per lane row ----
    use_packed = (D < 128) and (128 % D == 0) and (N % (128 // D) == 0)
    if use_packed:
        g = 128 // D
        Np = N // g
        W = 128
        xp = x.reshape(Np, W)                                  # contiguous, free
        wp = jnp.tile(w_f32.reshape(-1), g).reshape(1, W)
        bp = jnp.tile(b_f32.reshape(-1), g).reshape(1, W)
        lane = jnp.arange(W, dtype=jnp.int32)
        seg = (lane[:, None] // D == lane[None, :] // D).astype(jnp.float32)

        rt = _pick_row_tile(Np, W, itemsize)
        grid = (pl.cdiv(Np, rt),)
        out = pl.pallas_call(
            functools.partial(_ln_packed_kernel, inv_d=inv_d, eps=eps),
            out_shape=jax.ShapeDtypeStruct((Np, W), x.dtype),
            grid_spec=pltpu.PrefetchScalarGridSpec(
                num_scalar_prefetch=0,
                grid=grid,
                in_specs=[
                    pl.BlockSpec((rt, W), lambda i: (i, 0)),
                    pl.BlockSpec((W, W), lambda i: (0, 0)),    # segment matrix: resident
                    pl.BlockSpec((1, W), lambda i: (0, 0)),    # gamma (packed): resident
                    pl.BlockSpec((1, W), lambda i: (0, 0)),    # beta  (packed): resident
                ],
                out_specs=pl.BlockSpec((rt, W), lambda i: (i, 0)),
            ),
            compiler_params=compiler_params,
        )(xp, seg, wp, bp)
        return out.reshape(orig_shape)

    # ---- general path (D >= 128, or D not evenly packing into 128 lanes) ----
    x2 = x.reshape(N, D)                                       # contiguous, free
    rt = _pick_row_tile(N, D, itemsize)
    grid = (pl.cdiv(N, rt),)
    out = pl.pallas_call(
        functools.partial(_ln_general_kernel, inv_d=inv_d, eps=eps),
        out_shape=jax.ShapeDtypeStruct((N, D), x.dtype),
        grid_spec=pltpu.PrefetchScalarGridSpec(
            num_scalar_prefetch=0,
            grid=grid,
            in_specs=[
                pl.BlockSpec((rt, D), lambda i: (i, 0)),
                pl.BlockSpec((1, D), lambda i: (0, 0)),        # gamma: resident
                pl.BlockSpec((1, D), lambda i: (0, 0)),        # beta: resident
            ],
            out_specs=pl.BlockSpec((rt, D), lambda i: (i, 0)),
        ),
        compiler_params=compiler_params,
    )(x2, w_f32, b_f32)
    return out.reshape(orig_shape)


def _reference_layernorm(x, w, b, eps=1e-5):
    """Plain-JAX mirror of nn.LayerNorm(d_model) for a correctness check."""
    x = x.astype(jnp.float32)
    mean = jnp.mean(x, axis=-1, keepdims=True)
    var = jnp.mean((x - mean) ** 2, axis=-1, keepdims=True)
    return (x - mean) / jnp.sqrt(var + eps) * w + b


if __name__ == "__main__":
    key = jax.random.PRNGKey(0)
    k1, k2, k3, k4 = jax.random.split(key, 4)

    # Small-d_model (lane-dense packed) path: (batch=2, seq=8, d_model=32)
    B, L, D = 2, 8, 32
    x = jax.random.normal(k1, (B, L, D), dtype=jnp.float32)
    w = 1.0 + 0.1 * jax.random.normal(k2, (D,), dtype=jnp.float32)
    b = 0.1 * jax.random.normal(k3, (D,), dtype=jnp.float32)

    out = normalization(x, w, b, method="layer")
    jax.block_until_ready(out)
    ref = _reference_layernorm(x, w, b)
    assert out.shape == x.shape
    assert jnp.allclose(out, ref, atol=1e-4, rtol=1e-4)

    # General path (d_model >= 128)
    D2 = 256
    x2 = jax.random.normal(k4, (B, L, D2), dtype=jnp.float32)
    w2 = 1.0 + 0.05 * jnp.ones((D2,), jnp.float32)
    b2 = 0.05 * jnp.ones((D2,), jnp.float32)
    out2 = normalization(x2, w2, b2, method="layer")
    jax.block_until_ready(out2)
    ref2 = _reference_layernorm(x2, w2, b2)
    assert jnp.allclose(out2, ref2, atol=1e-4, rtol=1e-4)

    # bf16 input through the packed path (loose tolerance for bf16 I/O)
    xb = x.astype(jnp.bfloat16)
    outb = normalization(xb, w, b, method="layer")
    jax.block_until_ready(outb)
    refb = _reference_layernorm(xb.astype(jnp.float32), w, b)
    assert jnp.allclose(outb.astype(jnp.float32), refb, atol=3e-2, rtol=3e-2)

    # method='none' path (identity, as in the torch module)
    out_none = normalization(x, method="none")
    assert jnp.allclose(out_none, x)

    print("KERNEL_OK")
</pallas_src>

<mosaic_0001>
module attributes {stable_mosaic.version = 11 : i64} {
  func.func @_ln_packed_kernel(%arg0: i32, %arg1: memref<4x128xf32, #tpu.memory_space<vmem>>, %arg2: memref<128x128xf32, #tpu.memory_space<vmem>>, %arg3: memref<1x128xf32, #tpu.memory_space<vmem>>, %arg4: memref<1x128xf32, #tpu.memory_space<vmem>>, %arg5: memref<4x128xf32, #tpu.memory_space<vmem>>) attributes {dimension_semantics = [#tpu.dimension_semantics<parallel>], iteration_bounds = array<i64: 1>, scalar_prefetch = 0 : i64, scratch_operands = 0 : i64, tpu.core_type = #tpu.core_type<tc>, window_params = [{transform_indices = @transform_0, window_bounds = array<i64: 4, 128>}, {pipeline_mode = #tpu.pipeline_mode<synchronous>, transform_indices = @transform_1, window_bounds = array<i64: 128, 128>}, {pipeline_mode = #tpu.pipeline_mode<synchronous>, transform_indices = @transform_2, window_bounds = array<i64: 1, 128>}, {pipeline_mode = #tpu.pipeline_mode<synchronous>, transform_indices = @transform_3, window_bounds = array<i64: 1, 128>}, {transform_indices = @transform_4, window_bounds = array<i64: 4, 128>}]} {
    %c0 = arith.constant 0 : index
    %c0_0 = arith.constant 0 : index
    %0 = vector.load %arg1[%c0, %c0_0] : memref<4x128xf32, #tpu.memory_space<vmem>>, vector<4x128xf32>
    %c0_1 = arith.constant 0 : index
    %c0_2 = arith.constant 0 : index
    %1 = vector.load %arg2[%c0_1, %c0_2] : memref<128x128xf32, #tpu.memory_space<vmem>>, vector<128x128xf32>
    %cst = arith.constant dense<0.000000e+00> : vector<4x128xf32>
    %2 = tpu.matmul %0, %1, %cst {dimension_numbers = #tpu.dot_dimension_numbers<[1], [0], [0], [1], [0, 0, 1, 1], [], []>} : vector<4x128xf32>, vector<128x128xf32>, vector<4x128xf32> -> vector<4x128xf32>
    %3 = arith.mulf %0, %0 : vector<4x128xf32>
    %cst_3 = arith.constant dense<0.000000e+00> : vector<4x128xf32>
    %4 = tpu.matmul %3, %1, %cst_3 {dimension_numbers = #tpu.dot_dimension_numbers<[1], [0], [0], [1], [0, 0, 1, 1], [], []>} : vector<4x128xf32>, vector<128x128xf32>, vector<4x128xf32> -> vector<4x128xf32>
    %cst_4 = arith.constant 3.125000e-02 : f32
    %5 = vector.broadcast %cst_4 : f32 to vector<4x128xf32>
    %6 = arith.mulf %2, %5 : vector<4x128xf32>
    %cst_5 = arith.constant 3.125000e-02 : f32
    %7 = vector.broadcast %cst_5 : f32 to vector<4x128xf32>
    %8 = arith.mulf %4, %7 : vector<4x128xf32>
    %9 = arith.mulf %6, %6 : vector<4x128xf32>
    %10 = arith.subf %8, %9 : vector<4x128xf32>
    %cst_6 = arith.constant 0.000000e+00 : f32
    %11 = vector.broadcast %cst_6 : f32 to vector<4x128xf32>
    %12 = arith.maximumf %10, %11 : vector<4x128xf32>
    %cst_7 = arith.constant 9.99999974E-6 : f32
    %13 = vector.broadcast %cst_7 : f32 to vector<4x128xf32>
    %14 = arith.addf %12, %13 : vector<4x128xf32>
    %15 = math.rsqrt %14 : vector<4x128xf32>
    %c0_8 = arith.constant 0 : index
    %c0_9 = arith.constant 0 : index
    %16 = vector.load %arg3[%c0_8, %c0_9] : memref<1x128xf32, #tpu.memory_space<vmem>>, vector<1x128xf32>
    %17 = vector.broadcast %16 : vector<1x128xf32> to vector<4x128xf32>
    %18 = arith.mulf %15, %17 : vector<4x128xf32>
    %19 = arith.subf %0, %6 : vector<4x128xf32>
    %20 = arith.mulf %19, %18 : vector<4x128xf32>
    %c0_10 = arith.constant 0 : index
    %c0_11 = arith.constant 0 : index
    %21 = vector.load %arg4[%c0_10, %c0_11] : memref<1x128xf32, #tpu.memory_space<vmem>>, vector<1x128xf32>
    %22 = vector.broadcast %21 : vector<1x128xf32> to vector<4x128xf32>
    %23 = arith.addf %20, %22 : vector<4x128xf32>
    %c0_12 = arith.constant 0 : index
    %c0_13 = arith.constant 0 : index
    %24 = vector.load %arg5[%c0_12, %c0_13] : memref<4x128xf32, #tpu.memory_space<vmem>>, vector<4x128xf32>
    tpu.vector_store %arg5[%c0_12, %c0_13], %23 {strides = array<i32>} : memref<4x128xf32, #tpu.memory_space<vmem>>, vector<4x128xf32>,
    return
  }
  func.func @transform_0(%arg0: i32) -> (i32, i32) {
    %c0_i32 = arith.constant 0 : i32
    %c0_i32_0 = arith.constant 0 : i32
    return %arg0, %c0_i32 : i32, i32
  }
  func.func @transform_1(%arg0: i32) -> (i32, i32) {
    %c0_i32 = arith.constant 0 : i32
    %c0_i32_0 = arith.constant 0 : i32
    %c0_i32_1 = arith.constant 0 : i32
    return %c0_i32, %c0_i32_0 : i32, i32
  }
  func.func @transform_2(%arg0: i32) -> (i32, i32) {
    %c0_i32 = arith.constant 0 : i32
    %c0_i32_0 = arith.constant 0 : i32
    %c0_i32_1 = arith.constant 0 : i32
    return %c0_i32, %c0_i32_0 : i32, i32
  }
  func.func @transform_3(%arg0: i32) -> (i32, i32) {
    %c0_i32 = arith.constant 0 : i32
    %c0_i32_0 = arith.constant 0 : i32
    %c0_i32_1 = arith.constant 0 : i32
    return %c0_i32, %c0_i32_0 : i32, i32
  }
  func.func @transform_4(%arg0: i32) -> (i32, i32) {
    %c0_i32 = arith.constant 0 : i32
    %c0_i32_0 = arith.constant 0 : i32
    return %arg0, %c0_i32 : i32, i32
  }
}

</mosaic_0001>

<bundles_post_ra>
// kernel: tpu_custom_call.1
= control target key start
LH: loop header
LB: loop body
LE: loop exit
PB: predicated region body
PF: predicated region fallthrough
CT: control target
= control target key end

     0   :  { %9 = vsyncpa [#allocation3], 0  ;;  %s562_s0 = inlined_call_operand.hbm [shape: f32[4,128], index: 0, kind: input, shape index: {}]   ;;  %s563_s1 = inlined_call_operand.hbm [shape: f32[128,128], index: 1, kind: input, shape index: {}]   ;;  %s564_s2 = inlined_call_operand.vmem [shape: f32[1,128], index: 2, kind: input, shape index: {}]   ;;  %s565_s3 = inlined_call_operand.vmem [shape: f32[1,128], index: 3, kind: input, shape index: {}]   ;;  %s566_s4 = inlined_call_operand.hbm [shape: f32[4,128], index: 4, kind: output, shape index: {}]  }
   0x1   :  { %10 = vsyncpa [#allocation6], 0 }
   0x2   :  { %11 = vsyncpa [#allocation4], 0  ;;  %s480_s15 = smov [#allocation2]   ;;  %s481_s17 = smov [#allocation5]  }
   0x3   :  { %s18_s16 = sshll.u32 %s480_s15, 4  ;;  %s27_s18 = sshll.u32 %s481_s17, 4  ;;  %s19_s16 = int_to_ptr.vmem [resolvable:$true] %s18_s16  ;;  %s513_s18 = int_to_ptr.vmem [resolvable:$true] %s27_s18 }
   0x4   :  { %s408_s21 = scalar_lea.hbm %s562_s0, 64 }
   0x5   :  { %p409_p0 = scmp.ne.s32.totalorder %s562_s0, %s408_s21  ;;  %p412_p1 = scmp.lt.u32.totalorder %s408_s21, %s562_s0 }
   0x7   :  { %p414_p2 = pnand %p412_p1, %p409_p0 }
   0x9   :  { %417 = shalt.err (!%p414_p2)
}
   0xa   :  { %s418_s26 = scalar_lea.vmem %s19_s16, 64  ;;  %p423_p4 = scmp.lt.s32.totalorder %s19_s16, %s19_s16 }
   0xb   :  { %p419_p3 = scmp.ne.s32.totalorder %s19_s16, %s418_s26  ;;  %p424_p5 = scmp.lt.s32.totalorder %s418_s26, %s418_s26 }
   0xd   :  { %p425_p6 = por %p424_p5, %p423_p4 }
   0xf   :  { %p426_p7 = pnand %p425_p6, %p419_p3 }
  0x11   :  { %429 = shalt.err (!%p426_p7)
}
  0x12   :  { %21 = dma.hbm_to_vmem [thread:$0]  %s562_s0, 64, %s19_s16, [#allocation3]  }
  0x13   :  { %s430_s5 = scalar_lea.hbm %s563_s1, 2048 }
  0x14   :  { %p431_p8 = scmp.ne.s32.totalorder %s563_s1, %s430_s5  ;;  %p434_p9 = scmp.lt.u32.totalorder %s430_s5, %s563_s1 }
  0x16   :  { %p436_p10 = pnand %p434_p9, %p431_p8 }
  0x18   :  { %439 = shalt.err (!%p436_p10)
}
  0x19   :  { %s440_s10 = scalar_lea.vmem %s513_s18, 2048  ;;  %p445_p12 = scmp.lt.s32.totalorder %s513_s18, %s513_s18 }
  0x1a   :  { %p441_p11 = scmp.ne.s32.totalorder %s513_s18, %s440_s10  ;;  %p446_p13 = scmp.lt.s32.totalorder %s440_s10, %s440_s10 }
  0x1c   :  { %p447_p0 = por %p446_p13, %p445_p12 }
  0x1e   :  { %p448_p1 = pnand %p447_p0, %p441_p11 }
  0x20   :  { %451 = shalt.err (!%p448_p1)
}
  0x21   :  { %s482_s0 = smov 128   ;;  %s483_s11 = smov 8  }
  0x22   :  { %33 = dma.hbm_to_vmem [thread:$0]  %s563_s1, 2048, %s513_s18, [#allocation6], %s482_s0, %s482_s0, %s483_s11  }
  0x23   :  { %474 = dma.done.wait [#allocation3], 64  }
  0x24   :  { %475 = vsyncadd [#allocation3], 4294967232 }
  0x25   :  { %476 = dma.done.wait [#allocation6], 2048  }
  0x26   :  { %477 = vsyncadd [#allocation6], 4294965248  ;;  %v484_v0 = vmov 0.0|0.0   ;;  %vm485_vm0 = vmmov 0   ;;  %v486_v1 = vmov 0.0   ;;  %v45_v2 = vld [vmem:[#allocation5] sm:$0xff] }
  0x27   :  { %350 = vmatprep.subr.bf16.mxu0 %v484_v0  ;;  %374 = vmatprep.subr.bf16.mxu1 %v484_v0  ;;  %v46_v3 = vld [vmem:[#allocation5 + $0x8] sm:$0xff]  ;;  %v47_v4 = vld [vmem:[#allocation5 + $0x10] sm:$0xff]  ;;  %v48_v6 = vld [vmem:[#allocation5 + $0x18] sm:$0xff]  ;;  %s487_s17 = smov [#allocation7]  }
  0x28   :  { %312 = vmatprep.mubr.msk.f32.mxu0 %vm485_vm0, %v486_v1  ;;  %347 = vmatprep.mubr.msk.f32.mxu1 %vm485_vm0, %v486_v1  ;;  %v351_v5 = vpack.c.bf16 %v46_v3, %v45_v2  ;;  %v354_v7 = vpack.c.bf16 %v48_v6, %v47_v4  ;;  %v49_v8 = vld [vmem:[#allocation5 + $0x20] sm:$0xff]  ;;  %v50_v9 = vld [vmem:[#allocation5 + $0x28] sm:$0xff]  ;;  %v51_v11 = vld [vmem:[#allocation5 + $0x30] sm:$0xff]  ;;  %s234_s18 = sshll.u32 %s487_s17, 4  ;;  %s235_s18 = int_to_ptr.vmem [resolvable:$true] %s234_s18 }
  0x29   :  { %v357_v10 = vpack.c.bf16 %v50_v9, %v49_v8  ;;  %v52_v12 = vld [vmem:[#allocation5 + $0x38] sm:$0xff]  ;;  %v53_v14 = vld [vmem:[#allocation5 + $0x40] sm:$0xff]  ;;  %v54_v15 = vld [vmem:[#allocation5 + $0x48] sm:$0xff]  ;;  %s452_s19 = scalar_lea.vmem %s235_s18, 64  ;;  %p457_p3 = scmp.lt.s32.totalorder %s235_s18, %s235_s18 }
  0x2a   :  { %352 = vmatpush3.bf16.msra.mxu0 %v351_v5  ;;  %376 = vmatpush3.bf16.msra.mxu1 %v351_v5  ;;  %v360_v13 = vpack.c.bf16 %v52_v12, %v51_v11  ;;  %v363_v16 = vpack.c.bf16 %v54_v15, %v53_v14  ;;  %v55_v17 = vld [vmem:[#allocation5 + $0x50] sm:$0xff]  ;;  %v56_v18 = vld [vmem:[#allocation5 + $0x58] sm:$0xff]  ;;  %v57_v20 = vld [vmem:[#allocation5 + $0x60] sm:$0xff]  ;;  %p453_p2 = scmp.ne.s32.totalorder %s235_s18, %s452_s19  ;;  %p458_p4 = scmp.lt.s32.totalorder %s452_s19, %s452_s19 }
  0x2b   :  { %353 = vmatprep.subr.bf16.mxu0 %v484_v0  ;;  %377 = vmatprep.subr.bf16.mxu1 %v484_v0  ;;  %v366_v19 = vpack.c.bf16 %v56_v18, %v55_v17  ;;  %v58_v21 = vld [vmem:[#allocation5 + $0x68] sm:$0xff]  ;;  %v59_v23 = vld [vmem:[#allocation5 + $0x70] sm:$0xff]  ;;  %v60_v24 = vld [vmem:[#allocation5 + $0x78] sm:$0xff] }
  0x2c   :  { %v369_v22 = vpack.c.bf16 %v58_v21, %v57_v20  ;;  %v372_v25 = vpack.c.bf16 %v60_v24, %v59_v23  ;;  %v44_v26 = vld [vmem:[#allocation2] sm:$0xf]  ;;  %p459_p5 = por %p458_p4, %p457_p3 }
  0x2d   :  { %v131_v27 = vmul.f32 %v44_v26, %v44_v26  ;;  %v244_v38 = vld [vmem:[%s564_s2] ss:$0 sm:$0xff] }
  0x2e   :  { %355 = vmatpush3.bf16.msra.mxu0 %v354_v7  ;;  %379 = vmatpush3.bf16.msra.mxu1 %v354_v7  ;;  %v245_v42 = vld [vmem:[%s565_s3] ss:$0 sm:$0xff]  ;;  %p460_p6 = pnand %p459_p5, %p453_p2 }
  0x2f   :  { %356 = vmatprep.subr.bf16.mxu0 %v484_v0  ;;  %380 = vmatprep.subr.bf16.mxu1 %v484_v0 }
  0x32   :  { %358 = vmatpush3.bf16.msra.mxu0 %v357_v10  ;;  %382 = vmatpush3.bf16.msra.mxu1 %v357_v10 }
  0x33   :  { %359 = vmatprep.subr.bf16.mxu0 %v484_v0  ;;  %383 = vmatprep.subr.bf16.mxu1 %v484_v0 }
  0x36   :  { %361 = vmatpush3.bf16.msra.mxu0 %v360_v13  ;;  %385 = vmatpush3.bf16.msra.mxu1 %v360_v13 }
  0x37   :  { %362 = vmatprep.subr.bf16.mxu0 %v484_v0  ;;  %386 = vmatprep.subr.bf16.mxu1 %v484_v0 }
  0x3a   :  { %364 = vmatpush3.bf16.msra.mxu0 %v363_v16  ;;  %388 = vmatpush3.bf16.msra.mxu1 %v363_v16 }
  0x3b   :  { %365 = vmatprep.subr.bf16.mxu0 %v484_v0  ;;  %389 = vmatprep.subr.bf16.mxu1 %v484_v0 }
  0x3e   :  { %367 = vmatpush3.bf16.msra.mxu0 %v366_v19  ;;  %391 = vmatpush3.bf16.msra.mxu1 %v366_v19 }
  0x3f   :  { %368 = vmatprep.subr.bf16.mxu0 %v484_v0  ;;  %392 = vmatprep.subr.bf16.mxu1 %v484_v0 }
  0x42   :  { %370 = vmatpush3.bf16.msra.mxu0 %v369_v22  ;;  %394 = vmatpush3.bf16.msra.mxu1 %v369_v22 }
  0x43   :  { %371 = vmatprep.subr.bf16.mxu0 %v484_v0  ;;  %395 = vmatprep.subr.bf16.mxu1 %v484_v0 }
  0x46   :  { %373 = vmatpush3.bf16.msra.mxu0 %v372_v25  ;;  %397 = vmatpush3.bf16.msra.mxu1 %v372_v25 }
  0x49   :  { %313 = vmatmul.mubr.f32.vlgmr.msra.gmra.mrb[0].mxu0 %v44_v26  ;;  %348 = vmatmul.mubr.f32.vlgmr.msra.gmra.mrb[0].mxu1 %v131_v27 }
 0x11c   :  { %v127_v28 = vpop.f32.mrb[0].mxu0  ;;  %v198_v29 = vpop.f32.mrb[0].mxu1 }
 0x11d   :  { %v202_v30 = vmul.f32 0.03125, %v127_v28  ;;  %v314_v31 = vpop.f32.mrb[1].mxu0  ;;  %v203_v32 = vmul.f32 0.03125, %v198_v29  ;;  %v349_v33 = vpop.f32.mrb[1].mxu1 }
 0x11f   :  { %v204_v34 = vmul.f32 %v202_v30, %v202_v30  ;;  %v217_v40 = vsub.f32 %v44_v26, %v202_v30 }
 0x121   :  { %v205_v35 = vsub.f32 %v203_v32, %v204_v34 }
 0x123   :  { %v206_v36 = vmax.f32 %v205_v35, 0.0 }
 0x125   :  { %v207_v37 = vadd.f32 1e-05, %v206_v36 }
 0x127   :  { %406 = vrsqrt.f32 %v207_v37 }
 0x131   :  { %v407_v39 = vpop.eup %406 }
 0x132   :  { %v216_v41 = vmul.f32 %v407_v39, %v244_v38 }
 0x134   :  { %v218_v43 = vmul.f32 %v217_v40, %v216_v41 }
 0x136   :  { %v226_v44 = vadd.f32 %v245_v42, %v218_v43 }
 0x138   :  { %227 = vst [vmem:[#allocation7] sm:$0xf] %v226_v44 }
 0x139   :  { %463 = shalt.err (!%p460_p6)
}
 0x13a   :  { %s464_s21 = scalar_lea.hbm %s566_s4, 64 }
 0x13b   :  { %p465_p7 = scmp.ne.s32.totalorder %s566_s4, %s464_s21  ;;  %p468_p8 = scmp.lt.u32.totalorder %s464_s21, %s566_s4 }
 0x13d   :  { %p470_p9 = pnand %p468_p8, %p465_p7 }
 0x13f   :  { %473 = shalt.err (!%p470_p9)
}
 0x140   :  { %237 = dma.vmem_to_hbm [thread:$0]  %s235_s18, 64, %s566_s4, [#allocation4]  }
 0x141   :  { %478 = dma.done.wait [#allocation4], 64  }
 0x142   :  { %479 = vsyncadd [#allocation4], 4294967232 }
 0x143   :  { %241 = vsyncpa [#allocation3], 1 }
 0x144   :  { %242 = vsyncpa [#allocation6], 1 }
 0x145   :  { %243 = vsyncpa [#allocation4], 1 }

</bundles_post_ra>
